<compile_context>
chip_gen: v7x
topology: tpu7x:2x2x1
jax: 0.10.0
libtpu: 0.0.40
codegen_flags: <defaults>
</compile_context>

<pallas_src>
import functools

import jax
import jax.numpy as jnp
from jax.experimental import pallas as pl
from jax.experimental.pallas import tpu as pltpu

_BN_EPS = 1e-5
# Safe on every generation (v5e/v6e: 128 MiB physical, v7x: 64 MiB physical).
_VMEM_LIMIT = 64 * 1024 * 1024


def _round_up(n, m):
    return (n + m - 1) // m * m


def _stats_kernel(x_ref, w1_ref, gamma_ref, beta_ref, h_ref, ss_ref, *, inv_n):
    """Phase 1: h = x @ w1, accumulate per-feature stats, finalize BN scale/shift."""
    i = pl.program_id(0)
    n_steps = pl.num_programs(0)

    # MXU matmul in the operand dtype (no force-upcast), f32 accumulation.
    h = jnp.dot(x_ref[...], w1_ref[...], preferred_element_type=jnp.float32)
    h_ref[...] = h.astype(h_ref.dtype)

    tile_stats = jnp.concatenate(
        [jnp.sum(h, axis=0, keepdims=True),
         jnp.sum(h * h, axis=0, keepdims=True)],
        axis=0)                                                    # (2, H)

    @pl.when(i == 0)
    def _init():
        ss_ref[...] = tile_stats

    @pl.when(i > 0)
    def _accumulate():
        ss_ref[...] = ss_ref[...] + tile_stats

    @pl.when(i == n_steps - 1)
    def _finalize():
        acc = ss_ref[...]
        mean = acc[0:1, :] * inv_n
        # Single-pass variance E[h^2] - mean^2, clamped at 0. h is accumulated
        # in f32 and (with the Linear-1 bias folded away) roughly zero-mean, so
        # cancellation is benign; a Welford-style tile merge is the fallback if
        # activations ever have a huge mean/std ratio.
        var = jnp.maximum(acc[1:2, :] * inv_n - mean * mean, 0.0)
        scale = gamma_ref[...].astype(jnp.float32) * jax.lax.rsqrt(var + _BN_EPS)
        shift = beta_ref[...].astype(jnp.float32) - mean * scale
        ss_ref[...] = jnp.concatenate([scale, shift], axis=0)


def _apply_kernel(h_ref, ss_ref, w2_ref, o_ref):
    """Phase 2: fused BN scale/shift + ReLU, second matmul, L2 row-normalize."""
    ss = ss_ref[...]                                               # (2, H) f32
    scale = ss[0:1, :]
    shift = ss[1:2, :]
    h = h_ref[...].astype(jnp.float32)
    a = jnp.maximum(h * scale + shift, 0.0)                        # BN + ReLU, one FMA + max
    z = jnp.dot(a.astype(w2_ref.dtype), w2_ref[...],
                preferred_element_type=jnp.float32)                # (TB, D_out_pad)
    # F.normalize(dim=1): z / max(||z||, 1e-12) == z * rsqrt(max(||z||^2, 1e-24))
    sumsq = jnp.sum(z * z, axis=1, keepdims=True)
    o_ref[...] = (z * jax.lax.rsqrt(jnp.maximum(sumsq, 1e-24))).astype(o_ref.dtype)


@functools.partial(jax.jit, static_argnames=("block_b",))
def projection_forward(x, w1, gamma, beta, w2, *, block_b=256):
    """x:(B,D_in), w1:(D_in,H), gamma/beta:(1,H) or (H,), w2:(H,D_out) -> (B,D_out)."""
    B, d_in = x.shape
    hidden = w1.shape[1]
    d_out = w2.shape[1]

    h_pad = _round_up(hidden, 128)       # lane-dense hidden features
    d_out_pad = _round_up(d_out, 128)    # lane-dense output stores
    tb = min(_round_up(block_b, 8), _round_up(B, 8))   # batch tile, sublane aligned
    b_pad = _round_up(B, tb)
    n_bt = b_pad // tb

    gamma = jnp.asarray(gamma, jnp.float32).reshape(1, hidden)
    beta = jnp.asarray(beta, jnp.float32).reshape(1, hidden)
    if h_pad != hidden:
        w1 = jnp.pad(w1, ((0, 0), (0, h_pad - hidden)))
        gamma = jnp.pad(gamma, ((0, 0), (0, h_pad - hidden)))
        beta = jnp.pad(beta, ((0, 0), (0, h_pad - hidden)))
        w2 = jnp.pad(w2, ((0, h_pad - hidden), (0, 0)))
    if d_out_pad != d_out:
        w2 = jnp.pad(w2, ((0, 0), (0, d_out_pad - d_out)))
    if b_pad != B:
        x = jnp.pad(x, ((0, b_pad - B), (0, 0)))   # zero rows -> zero stats contribution

    # Phase 1: first matmul + BN statistics (reduction over batch tiles).
    h, scale_shift = pl.pallas_call(
        functools.partial(_stats_kernel, inv_n=1.0 / B),
        out_shape=(jax.ShapeDtypeStruct((b_pad, h_pad), x.dtype),
                   jax.ShapeDtypeStruct((2, h_pad), jnp.float32)),
        grid=(n_bt,),
        in_specs=[
            pl.BlockSpec((tb, d_in), lambda i: (i, 0)),        # x tile
            pl.BlockSpec((d_in, h_pad), lambda i: (0, 0)),     # w1 resident
            pl.BlockSpec((1, h_pad), lambda i: (0, 0)),        # gamma resident
            pl.BlockSpec((1, h_pad), lambda i: (0, 0)),        # beta resident
        ],
        out_specs=[
            pl.BlockSpec((tb, h_pad), lambda i: (i, 0)),       # h tiles
            pl.BlockSpec((2, h_pad), lambda i: (0, 0)),        # resident stats accumulator
        ],
        compiler_params=pltpu.CompilerParams(
            dimension_semantics=("arbitrary",),
            vmem_limit_bytes=_VMEM_LIMIT),
    )(x, w1, gamma, beta)

    # Phase 2: BN apply + ReLU + second matmul + L2 normalize (parallel over batch).
    out = pl.pallas_call(
        _apply_kernel,
        out_shape=jax.ShapeDtypeStruct((b_pad, d_out_pad), x.dtype),
        grid=(n_bt,),
        in_specs=[
            pl.BlockSpec((tb, h_pad), lambda i: (i, 0)),       # h tile
            pl.BlockSpec((2, h_pad), lambda i: (0, 0)),        # scale/shift resident
            pl.BlockSpec((h_pad, d_out_pad), lambda i: (0, 0)),# w2 resident
        ],
        out_specs=pl.BlockSpec((tb, d_out_pad), lambda i: (i, 0)),
        compiler_params=pltpu.CompilerParams(
            dimension_semantics=("parallel",),                 # megacore splits batch tiles
            vmem_limit_bytes=_VMEM_LIMIT),
    )(h, scale_shift, w2)

    return out[:B, :d_out]


def reference_forward(x, w1, b1, gamma, beta, w2):
    """Pure-JAX reference of the PyTorch module (INCLUDING the Linear-1 bias)."""
    h = x @ w1 + b1
    mean = jnp.mean(h, axis=0, keepdims=True)
    var = jnp.mean((h - mean) ** 2, axis=0, keepdims=True)
    h = (h - mean) * jax.lax.rsqrt(var + _BN_EPS) * gamma + beta
    h = jnp.maximum(h, 0.0)
    z = h @ w2
    n = jnp.sqrt(jnp.sum(z * z, axis=1, keepdims=True))
    return z / jnp.maximum(n, 1e-12)


if __name__ == "__main__":
    # Small shapes consistent with the module (input_dim -> hidden_dim -> output_dim).
    B, input_dim, hidden_dim, output_dim = 16, 32, 32, 16

    key = jax.random.PRNGKey(0)
    kx, kw1, kb1, kw2 = jax.random.split(key, 4)

    x = jax.random.normal(kx, (B, input_dim), dtype=jnp.float32)

    bound1 = 1.0 / (input_dim ** 0.5)
    w1 = jax.random.uniform(kw1, (input_dim, hidden_dim), jnp.float32, -bound1, bound1)
    b1 = jax.random.uniform(kb1, (1, hidden_dim), jnp.float32, -bound1, bound1)
    gamma = jnp.ones((1, hidden_dim), jnp.float32)   # BatchNorm1d affine weight
    beta = jnp.zeros((1, hidden_dim), jnp.float32)   # BatchNorm1d affine bias
    bound2 = 1.0 / (hidden_dim ** 0.5)
    w2 = jax.random.uniform(kw2, (hidden_dim, output_dim), jnp.float32, -bound2, bound2)

    # block_b=8 -> two batch tiles, exercising the stats accumulation + finalize path.
    out = projection_forward(x, w1, gamma, beta, w2, block_b=8)
    out = jax.block_until_ready(out)

    # Reference includes the Linear-1 bias: training-mode BN cancels it, so the
    # bias-free kernel must match it anyway.
    ref = reference_forward(x, w1, b1, gamma, beta, w2)
    assert out.shape == (B, output_dim)
    assert jnp.allclose(out, ref, atol=1e-5, rtol=1e-5), float(jnp.max(jnp.abs(out - ref)))

    print("KERNEL_OK")
</pallas_src>

<mosaic_0001>
module attributes {stable_mosaic.version = 11 : i64} {
  func.func @_stats_kernel(%arg0: i32, %arg1: memref<8x32xf32, #tpu.memory_space<vmem>>, %arg2: memref<32x128xf32, #tpu.memory_space<vmem>>, %arg3: memref<1x128xf32, #tpu.memory_space<vmem>>, %arg4: memref<1x128xf32, #tpu.memory_space<vmem>>, %arg5: memref<8x128xf32, #tpu.memory_space<vmem>>, %arg6: memref<2x128xf32, #tpu.memory_space<vmem>>) attributes {dimension_semantics = [#tpu.dimension_semantics<arbitrary>], iteration_bounds = array<i64: 2>, scalar_prefetch = 0 : i64, scratch_operands = 0 : i64, tpu.core_type = #tpu.core_type<tc>, window_params = [{transform_indices = @transform_0, window_bounds = array<i64: 8, 32>}, {pipeline_mode = #tpu.pipeline_mode<synchronous>, transform_indices = @transform_1, window_bounds = array<i64: 32, 128>}, {pipeline_mode = #tpu.pipeline_mode<synchronous>, transform_indices = @transform_2, window_bounds = array<i64: 1, 128>}, {pipeline_mode = #tpu.pipeline_mode<synchronous>, transform_indices = @transform_3, window_bounds = array<i64: 1, 128>}, {transform_indices = @transform_4, window_bounds = array<i64: 8, 128>}, {pipeline_mode = #tpu.pipeline_mode<synchronous>, transform_indices = @transform_5, window_bounds = array<i64: 2, 128>}]} {
    %c0 = arith.constant 0 : index
    %c0_0 = arith.constant 0 : index
    %0 = vector.load %arg1[%c0, %c0_0] : memref<8x32xf32, #tpu.memory_space<vmem>>, vector<8x32xf32>
    %c0_1 = arith.constant 0 : index
    %c0_2 = arith.constant 0 : index
    %1 = vector.load %arg2[%c0_1, %c0_2] : memref<32x128xf32, #tpu.memory_space<vmem>>, vector<32x128xf32>
    %cst = arith.constant dense<0.000000e+00> : vector<8x128xf32>
    %2 = tpu.matmul %0, %1, %cst {dimension_numbers = #tpu.dot_dimension_numbers<[1], [0], [0], [1], [0, 0, 1, 1], [], []>} : vector<8x32xf32>, vector<32x128xf32>, vector<8x128xf32> -> vector<8x128xf32>
    %c0_3 = arith.constant 0 : index
    %c0_4 = arith.constant 0 : index
    %3 = vector.load %arg5[%c0_3, %c0_4] : memref<8x128xf32, #tpu.memory_space<vmem>>, vector<8x128xf32>
    tpu.vector_store %arg5[%c0_3, %c0_4], %2 {strides = array<i32>} : memref<8x128xf32, #tpu.memory_space<vmem>>, vector<8x128xf32>,
    %cst_5 = arith.constant dense<0.000000e+00> : vector<128xf32>
    %4 = vector.multi_reduction <add>, %2, %cst_5 [0] : vector<8x128xf32> to vector<128xf32>
    %5 = vector.shape_cast %4 : vector<128xf32> to vector<1x128xf32>
    %6 = arith.mulf %2, %2 : vector<8x128xf32>
    %cst_6 = arith.constant dense<0.000000e+00> : vector<128xf32>
    %7 = vector.multi_reduction <add>, %6, %cst_6 [0] : vector<8x128xf32> to vector<128xf32>
    %8 = vector.shape_cast %7 : vector<128xf32> to vector<1x128xf32>
    %9 = tpu.concatenate %5, %8 in 0 : vector<1x128xf32>, vector<1x128xf32> -> vector<2x128xf32>
    %c0_i32 = arith.constant 0 : i32
    %10 = arith.cmpi eq, %arg0, %c0_i32 : i32
    %11 = arith.extui %10 : i1 to i32
    %c0_i32_7 = arith.constant 0 : i32
    %12 = arith.cmpi ne, %11, %c0_i32_7 : i32
    scf.if %12 {
      %c0_11 = arith.constant 0 : index
      %c0_12 = arith.constant 0 : index
      %19 = vector.load %arg6[%c0_11, %c0_12] : memref<2x128xf32, #tpu.memory_space<vmem>>, vector<2x128xf32>
      tpu.vector_store %arg6[%c0_11, %c0_12], %9 {strides = array<i32>} : memref<2x128xf32, #tpu.memory_space<vmem>>, vector<2x128xf32>,
    } else {
    }
    %c0_i32_8 = arith.constant 0 : i32
    %13 = arith.cmpi sgt, %arg0, %c0_i32_8 : i32
    %14 = arith.extui %13 : i1 to i32
    %c0_i32_9 = arith.constant 0 : i32
    %15 = arith.cmpi ne, %14, %c0_i32_9 : i32
    scf.if %15 {
      %c0_11 = arith.constant 0 : index
      %c0_12 = arith.constant 0 : index
      %19 = vector.load %arg6[%c0_11, %c0_12] : memref<2x128xf32, #tpu.memory_space<vmem>>, vector<2x128xf32>
      %20 = arith.addf %19, %9 : vector<2x128xf32>
      %c0_13 = arith.constant 0 : index
      %c0_14 = arith.constant 0 : index
      %21 = vector.load %arg6[%c0_13, %c0_14] : memref<2x128xf32, #tpu.memory_space<vmem>>, vector<2x128xf32>
      tpu.vector_store %arg6[%c0_13, %c0_14], %20 {strides = array<i32>} : memref<2x128xf32, #tpu.memory_space<vmem>>, vector<2x128xf32>,
    } else {
    }
    %c1_i32 = arith.constant 1 : i32
    %16 = arith.cmpi eq, %arg0, %c1_i32 : i32
    %17 = arith.extui %16 : i1 to i32
    %c0_i32_10 = arith.constant 0 : i32
    %18 = arith.cmpi ne, %17, %c0_i32_10 : i32
    scf.if %18 {
      %c0_11 = arith.constant 0 : index
      %c0_12 = arith.constant 0 : index
      %19 = vector.load %arg6[%c0_11, %c0_12] : memref<2x128xf32, #tpu.memory_space<vmem>>, vector<2x128xf32>
      %20 = vector.extract_strided_slice %19 {offsets = [0, 0], sizes = [1, 128], strides = [1, 1]} : vector<2x128xf32> to vector<1x128xf32>
      %cst_13 = arith.constant 6.250000e-02 : f32
      %21 = vector.broadcast %cst_13 : f32 to vector<1x128xf32>
      %22 = arith.mulf %20, %21 : vector<1x128xf32>
      %23 = vector.extract_strided_slice %19 {offsets = [1, 0], sizes = [1, 128], strides = [1, 1]} : vector<2x128xf32> to vector<1x128xf32>
      %cst_14 = arith.constant 6.250000e-02 : f32
      %24 = vector.broadcast %cst_14 : f32 to vector<1x128xf32>
      %25 = arith.mulf %23, %24 : vector<1x128xf32>
      %26 = arith.mulf %22, %22 : vector<1x128xf32>
      %27 = arith.subf %25, %26 : vector<1x128xf32>
      %cst_15 = arith.constant 0.000000e+00 : f32
      %28 = vector.broadcast %cst_15 : f32 to vector<1x128xf32>
      %29 = arith.maximumf %27, %28 : vector<1x128xf32>
      %c0_16 = arith.constant 0 : index
      %c0_17 = arith.constant 0 : index
      %30 = vector.load %arg3[%c0_16, %c0_17] : memref<1x128xf32, #tpu.memory_space<vmem>>, vector<1x128xf32>
      %cst_18 = arith.constant 9.99999974E-6 : f32
      %31 = vector.broadcast %cst_18 : f32 to vector<1x128xf32>
      %32 = arith.addf %29, %31 : vector<1x128xf32>
      %33 = math.rsqrt %32 : vector<1x128xf32>
      %34 = arith.mulf %30, %33 : vector<1x128xf32>
      %c0_19 = arith.constant 0 : index
      %c0_20 = arith.constant 0 : index
      %35 = vector.load %arg4[%c0_19, %c0_20] : memref<1x128xf32, #tpu.memory_space<vmem>>, vector<1x128xf32>
      %36 = arith.mulf %22, %34 : vector<1x128xf32>
      %37 = arith.subf %35, %36 : vector<1x128xf32>
      %38 = tpu.concatenate %34, %37 in 0 : vector<1x128xf32>, vector<1x128xf32> -> vector<2x128xf32>
      %c0_21 = arith.constant 0 : index
      %c0_22 = arith.constant 0 : index
      %39 = vector.load %arg6[%c0_21, %c0_22] : memref<2x128xf32, #tpu.memory_space<vmem>>, vector<2x128xf32>
      tpu.vector_store %arg6[%c0_21, %c0_22], %38 {strides = array<i32>} : memref<2x128xf32, #tpu.memory_space<vmem>>, vector<2x128xf32>,
    } else {
    }
    return
  }
  func.func @transform_0(%arg0: i32) -> (i32, i32) {
    %c0_i32 = arith.constant 0 : i32
    %c0_i32_0 = arith.constant 0 : i32
    return %arg0, %c0_i32 : i32, i32
  }
  func.func @transform_1(%arg0: i32) -> (i32, i32) {
    %c0_i32 = arith.constant 0 : i32
    %c0_i32_0 = arith.constant 0 : i32
    %c0_i32_1 = arith.constant 0 : i32
    return %c0_i32, %c0_i32_0 : i32, i32
  }
  func.func @transform_2(%arg0: i32) -> (i32, i32) {
    %c0_i32 = arith.constant 0 : i32
    %c0_i32_0 = arith.constant 0 : i32
    %c0_i32_1 = arith.constant 0 : i32
    return %c0_i32, %c0_i32_0 : i32, i32
  }
  func.func @transform_3(%arg0: i32) -> (i32, i32) {
    %c0_i32 = arith.constant 0 : i32
    %c0_i32_0 = arith.constant 0 : i32
    %c0_i32_1 = arith.constant 0 : i32
    return %c0_i32, %c0_i32_0 : i32, i32
  }
  func.func @transform_4(%arg0: i32) -> (i32, i32) {
    %c0_i32 = arith.constant 0 : i32
    %c0_i32_0 = arith.constant 0 : i32
    return %arg0, %c0_i32 : i32, i32
  }
  func.func @transform_5(%arg0: i32) -> (i32, i32) {
    %c0_i32 = arith.constant 0 : i32
    %c0_i32_0 = arith.constant 0 : i32
    %c0_i32_1 = arith.constant 0 : i32
    return %c0_i32, %c0_i32_0 : i32, i32
  }
}

module attributes {stable_mosaic.version = 11 : i64} {
  func.func @_apply_kernel(%arg0: i32, %arg1: memref<8x128xf32, #tpu.memory_space<vmem>>, %arg2: memref<2x128xf32, #tpu.memory_space<vmem>>, %arg3: memref<128x128xf32, #tpu.memory_space<vmem>>, %arg4: memref<8x128xf32, #tpu.memory_space<vmem>>) attributes {dimension_semantics = [#tpu.dimension_semantics<parallel>], iteration_bounds = array<i64: 2>, scalar_prefetch = 0 : i64, scratch_operands = 0 : i64, tpu.core_type = #tpu.core_type<tc>, window_params = [{transform_indices = @transform_0, window_bounds = array<i64: 8, 128>}, {pipeline_mode = #tpu.pipeline_mode<synchronous>, transform_indices = @transform_1, window_bounds = array<i64: 2, 128>}, {pipeline_mode = #tpu.pipeline_mode<synchronous>, transform_indices = @transform_2, window_bounds = array<i64: 128, 128>}, {transform_indices = @transform_3, window_bounds = array<i64: 8, 128>}]} {
    %c0 = arith.constant 0 : index
    %c0_0 = arith.constant 0 : index
    %0 = vector.load %arg2[%c0, %c0_0] : memref<2x128xf32, #tpu.memory_space<vmem>>, vector<2x128xf32>
    %1 = vector.extract_strided_slice %0 {offsets = [0, 0], sizes = [1, 128], strides = [1, 1]} : vector<2x128xf32> to vector<1x128xf32>
    %2 = vector.extract_strided_slice %0 {offsets = [1, 0], sizes = [1, 128], strides = [1, 1]} : vector<2x128xf32> to vector<1x128xf32>
    %c0_1 = arith.constant 0 : index
    %c0_2 = arith.constant 0 : index
    %3 = vector.load %arg1[%c0_1, %c0_2] : memref<8x128xf32, #tpu.memory_space<vmem>>, vector<8x128xf32>
    %4 = vector.broadcast %1 : vector<1x128xf32> to vector<8x128xf32>
    %5 = arith.mulf %3, %4 : vector<8x128xf32>
    %6 = vector.broadcast %2 : vector<1x128xf32> to vector<8x128xf32>
    %7 = arith.addf %5, %6 : vector<8x128xf32>
    %cst = arith.constant 0.000000e+00 : f32
    %8 = vector.broadcast %cst : f32 to vector<8x128xf32>
    %9 = arith.maximumf %7, %8 : vector<8x128xf32>
    %c0_3 = arith.constant 0 : index
    %c0_4 = arith.constant 0 : index
    %10 = vector.load %arg3[%c0_3, %c0_4] : memref<128x128xf32, #tpu.memory_space<vmem>>, vector<128x128xf32>
    %cst_5 = arith.constant dense<0.000000e+00> : vector<8x128xf32>
    %11 = tpu.matmul %9, %10, %cst_5 {dimension_numbers = #tpu.dot_dimension_numbers<[1], [0], [0], [1], [0, 0, 1, 1], [], []>} : vector<8x128xf32>, vector<128x128xf32>, vector<8x128xf32> -> vector<8x128xf32>
    %12 = arith.mulf %11, %11 : vector<8x128xf32>
    %cst_6 = arith.constant dense<0.000000e+00> : vector<8xf32>
    %13 = vector.multi_reduction <add>, %12, %cst_6 [1] : vector<8x128xf32> to vector<8xf32>
    %14 = vector.shape_cast %13 : vector<8xf32> to vector<8x1xf32>
    %cst_7 = arith.constant 1.000000e-24 : f32
    %15 = vector.broadcast %cst_7 : f32 to vector<8x1xf32>
    %16 = arith.maximumf %14, %15 : vector<8x1xf32>
    %17 = math.rsqrt %16 : vector<8x1xf32>
    %18 = vector.broadcast %17 : vector<8x1xf32> to vector<8x128xf32>
    %19 = arith.mulf %11, %18 : vector<8x128xf32>
    %c0_8 = arith.constant 0 : index
    %c0_9 = arith.constant 0 : index
    %20 = vector.load %arg4[%c0_8, %c0_9] : memref<8x128xf32, #tpu.memory_space<vmem>>, vector<8x128xf32>
    tpu.vector_store %arg4[%c0_8, %c0_9], %19 {strides = array<i32>} : memref<8x128xf32, #tpu.memory_space<vmem>>, vector<8x128xf32>,
    return
  }
  func.func @transform_0(%arg0: i32) -> (i32, i32) {
    %c0_i32 = arith.constant 0 : i32
    %c0_i32_0 = arith.constant 0 : i32
    return %arg0, %c0_i32 : i32, i32
  }
  func.func @transform_1(%arg0: i32) -> (i32, i32) {
    %c0_i32 = arith.constant 0 : i32
    %c0_i32_0 = arith.constant 0 : i32
    %c0_i32_1 = arith.constant 0 : i32
    return %c0_i32, %c0_i32_0 : i32, i32
  }
  func.func @transform_2(%arg0: i32) -> (i32, i32) {
    %c0_i32 = arith.constant 0 : i32
    %c0_i32_0 = arith.constant 0 : i32
    %c0_i32_1 = arith.constant 0 : i32
    return %c0_i32, %c0_i32_0 : i32, i32
  }
  func.func @transform_3(%arg0: i32) -> (i32, i32) {
    %c0_i32 = arith.constant 0 : i32
    %c0_i32_0 = arith.constant 0 : i32
    return %arg0, %c0_i32 : i32, i32
  }
}

</mosaic_0001>

<bundles_post_ra>
// kernel: projection_forward.2
= control target key start
LH: loop header
LB: loop body
LE: loop exit
PB: predicated region body
PF: predicated region fallthrough
CT: control target
= control target key end

     0   :  { %11 = vsyncpa [#allocation3], 0  ;;  %s1247_s0 = inlined_call_operand.hbm [shape: f32[16,32], index: 0, kind: input, shape index: {}]   ;;  %s1248_s1 = inlined_call_operand.hbm [shape: f32[32,128], index: 1, kind: input, shape index: {}]   ;;  %s1249_s2 = inlined_call_operand.hbm [shape: f32[1,128], index: 2, kind: input, shape index: {}]   ;;  %s1250_s3 = inlined_call_operand.hbm [shape: f32[1,128], index: 3, kind: input, shape index: {}]   ;;  %s1251_s4 = inlined_call_operand.hbm [shape: f32[16,128], index: 4, kind: output, shape index: {0}]   ;;  %s1252_s5 = inlined_call_operand.hbm [shape: f32[2,128], index: 5, kind: output, shape index: {1}]  }
   0x1   :  { %13 = vsyncpa [#allocation3 + $0x1], 0 }
   0x2   :  { %14 = vsyncpa [#allocation6], 0 }
   0x3   :  { %15 = vsyncpa [#allocation9], 0 }
   0x4   :  { %16 = vsyncpa [#allocation4], 0 }
   0x5   :  { %18 = vsyncpa [#allocation4 + $0x1], 0 }
   0x6   :  { %19 = vsyncpa [#allocation12], 0  ;;  %s965_s18 = smov 0   ;;  %s967_s19 = smov 0  }
   0x7   :  { %s969_s20 = smov 0   ;;  %s971_s21 = smov 0  }
   0x8 LB: > { %s986_s22 = sadd.s32 4294967295, %s921_s21   ;;  %s565_s23 = sadd.s32 4294967294, %s921_s21   ;;  %s921_s21 = sphi %s971_s21, %s1280_s21   ;;  %s917_s20 = sphi %s969_s20, %s1279_s20   ;;  %s913_s19 = sphi %s967_s19, %s1278_s19   ;;  %s909_s18 = sphi %s965_s18, %s1277_s18  }
   0x9   : > { %p45_p0 = scmp.ne.s32.totalorder %s913_s19, %s909_s18  ;;  %p1253_p1 = scmp.eq.s32.totalorder %s986_s22, 0 }
   0xa   : > { %p138_p3 = scmp.eq.s32.totalorder %s565_s23, 1  ;;  %p566_p5 = scmp.ge.s32.totalorder %s921_s21, 1 }
   0xb   : > { %p995_p4 = por %p1253_p1, %p45_p0  ;;  %p166_p7 = scmp.lt.s32.totalorder %s921_s21, 3 }
   0xc   : > { %p1000_p6 = por %p138_p3, %p45_p0  ;;  %s923_s27 = smov [#allocation5]  }
   0xd   : > { %s1256_s24 = scalar_select %p995_p4, 1, 0 }
   0xe   : > { %s1257_s25 = scalar_select %p1000_p6, 1, 0 }
   0xf   : > { %p1006_p9 = pnand %p566_p5, %p166_p7  ;;  %s178_s28 = sshll.u32 %s923_s27, 4  ;;  %s1010_s28 = int_to_ptr.vmem [resolvable:$true] %s178_s28 }
  0x10   : > { %s924_s30 = smov [#allocation7]   ;;  %s925_s7 = smov [#allocation8]  }
  0x11   : > { %s1258_s26 = scalar_select %p1006_p9, 1, 0 }
  0x12   : > { %p631_p10 = pneg %p1006_p9  ;;  %s192_s6 = sshll.u32 %s924_s30, 4  ;;  %s1021_s6 = int_to_ptr.vmem [resolvable:$true] %s192_s6 }
  0x13   : > { %s1023_s8 = sshll.u32 %s925_s7, 4  ;;  %s703_s11 = scalar_lea.hbm %s1248_s1, 512  ;;  %s204_s8 = int_to_ptr.vmem [resolvable:$true] %s1023_s8 }
  0x14   : > { %p1017_p12 = pnand %p631_p10, %p1253_p1  ;;  %p704_p13 = scmp.ne.s32.totalorder %s1248_s1, %s703_s11 }
  0x15   : > { %p710_p7 = scmp.lt.u32.totalorder %s703_s11, %s1248_s1 }
  0x16   : > { %p1033_p0 = pneg %p1017_p12 }
  0x18   : > { %p706_p3 = pnand %p1033_p0, %p704_p13 }
  0x1a   : > { %p707_p5 = pneg %p706_p3 }
  0x1c   : > { %p712_p10 = pnand %p710_p7, %p707_p5 }
  0x1e   : > { %715 = shalt.err (!%p712_p10)
}
  0x1f   : > { %s716_s17 = scalar_lea.vmem %s1010_s28, 512  ;;  %p724_p2 = scmp.lt.s32.totalorder %s1010_s28, %s1010_s28 }
  0x20   : > { %p717_p11 = scmp.ne.s32.totalorder %s1010_s28, %s716_s17  ;;  %p725_p6 = scmp.lt.s32.totalorder %s716_s17, %s716_s17 }
  0x22   : > { %p719_p8 = pnand %p717_p11, %p1033_p0  ;;  %p726_p13 = por %p725_p6, %p724_p2 }
  0x24   : > { %p720_p1 = pneg %p719_p8 }
  0x26   : > { %p727_p3 = pnand %p726_p13, %p720_p1 }
  0x28   : > { %730 = shalt.err (!%p727_p3)
}
  0x29   : > { %s926_s23 = smov 128   ;;  %s927_s27 = smov 8  }
  0x2a   : > { %634 = dma.hbm_to_vmem [thread:$0]  (!%p1017_p12), %s1248_s1, 512, %s1010_s28, [#allocation6], %s926_s23, %s926_s23, %s927_s27  }
  0x2b   : > { %s731_s11 = scalar_lea.hbm %s1249_s2, 16 }
  0x2c   : > { %p732_p2 = scmp.ne.s32.totalorder %s1249_s2, %s731_s11  ;;  %p738_p8 = scmp.lt.u32.totalorder %s731_s11, %s1249_s2 }
  0x2e   : > { %p734_p1 = pnand %p732_p2, %p1033_p0 }
  0x30   : > { %p735_p6 = pneg %p734_p1 }
  0x32   : > { %p740_p11 = pnand %p738_p8, %p735_p6 }
  0x34   : > { %743 = shalt.err (!%p740_p11)
}
  0x35   : > { %s744_s28 = scalar_lea.vmem %s1021_s6, 16  ;;  %s751_s17 = scalar_lea.vmem %s1021_s6, 32 }
  0x36   : > { %p745_p5 = scmp.ne.s32.totalorder %s1021_s6, %s744_s28  ;;  %p752_p13 = scmp.lt.s32.totalorder %s1021_s6, %s1021_s6 }
  0x37   : > { %p753_p3 = scmp.lt.s32.totalorder %s751_s17, %s744_s28 }
  0x38   : > { %p747_p7 = pnand %p745_p5, %p1033_p0 }
  0x39   : > { %p754_p2 = por %p753_p3, %p752_p13 }
  0x3a   : > { %p748_p10 = pneg %p747_p7 }
  0x3c   : > { %p755_p1 = pnand %p754_p2, %p748_p10 }
  0x3e   : > { %758 = shalt.err (!%p755_p1)
}
  0x3f   : > { %637 = dma.hbm_to_vmem [thread:$0]  (!%p1017_p12), %s1249_s2, 16, %s1021_s6, [#allocation6]  }
  0x40   : > { %s759_s9 = scalar_lea.hbm %s1250_s3, 16 }
  0x41   : > { %p760_p6 = scmp.ne.s32.totalorder %s1250_s3, %s759_s9  ;;  %p766_p5 = scmp.lt.u32.totalorder %s759_s9, %s1250_s3 }
  0x43   : > { %p762_p8 = pnand %p760_p6, %p1033_p0 }
  0x45   : > { %p763_p11 = pneg %p762_p8 }
  0x47   : > { %p768_p7 = pnand %p766_p5, %p763_p11 }
  0x49   : > { %771 = shalt.err (!%p768_p7)
}
  0x4a   : > { %s772_s15 = scalar_lea.vmem %s204_s8, 16  ;;  %s779_s6 = scalar_lea.vmem %s204_s8, 32 }
  0x4b   : > { %p773_p10 = scmp.ne.s32.totalorder %s204_s8, %s772_s15  ;;  %p780_p2 = scmp.lt.s32.totalorder %s204_s8, %s204_s8 }
  0x4c   : > { %p781_p1 = scmp.lt.s32.totalorder %s779_s6, %s772_s15 }
  0x4d   : > { %p775_p13 = pnand %p773_p10, %p1033_p0 }
  0x4e   : > { %p782_p4 = por %p781_p1, %p780_p2 }
  0x4f   : > { %p776_p3 = pneg %p775_p13 }
  0x51   : > { %p783_p9 = pnand %p782_p4, %p776_p3 }
  0x53   : > { %786 = shalt.err (!%p783_p9)
}
  0x54   : > { %640 = dma.hbm_to_vmem [thread:$0]  (!%p1017_p12), %s1250_s3, 16, %s204_s8, [#allocation9]  }
  0x55   : > { %s1098_s14 = sadd.s32 1, %s921_s21   ;;  %s32_s29 = sadd.s32 1, %s917_s20 }
  0x56   : > { %s29_s17 = ssub.s32 %s921_s21, %s1098_s14  ;;  %p39_p9 = scmp.ne.s32.totalorder %s917_s20, %s913_s19 }
  0x57   : > { %p30_p4 = scmp.eq.s32.totalorder %s29_s17, 0  ;;  %p40_p0 = scmp.eq.s32.totalorder %s921_s21, 0 }
  0x58   : > { %p652_p6 = scmp.lt.s32.totalorder %s921_s21, 2  ;;  %p1261_p11 = scmp.eq.s32.totalorder %s986_s22, 1 }
  0x59   : > { %s1108_s23 = scalar_select %p30_p4, %s917_s20, %s32_s29  }
  0x5a   : > { %p41_p8 = por %p40_p0, %p39_p9  ;;  %p1112_p5 = por %p1261_p11, %p39_p9 }
  0x5b   : > { %s214_s30 = sand.u32 1, %s917_s20   ;;  %s572_s7 = sshll.u32 %s921_s21, 7 }
  0x5c   : > { %s571_s8 = sshll.u32 %s214_s30, 3  ;;  %s1121_s11 = scalar_lea.hbm %s1247_s0, %s572_s7 }
  0x5d   : > { %s218_s12 = scalar_lea.vmem [#allocation2], %s571_s8  ;;  %p1123_p12 = pnand %p652_p6, %p41_p8 }
  0x5e   : > { %s225_s13 = sshll.u32 %s218_s12, 4  ;;  %s215_s6 = scalar_lea.sflag [#allocation3], %s214_s30  ;;  %s1127_s13 = int_to_ptr.vmem [resolvable:$true] %s225_s13 }
  0x5f   : > { %s787_s16 = scalar_lea.hbm %s1121_s11, 128  ;;  %p789_p10 = pneg %p1123_p12 }
  0x60   : > { %p788_p7 = scmp.ne.s32.totalorder %s1121_s11, %s787_s16  ;;  %s792_s29 = scalar_lea.hbm %s1247_s0, 256 }
  0x61   : > { %p793_p2 = scmp.lt.u32.totalorder %s1121_s11, %s1247_s0  ;;  %p794_p1 = scmp.lt.u32.totalorder %s792_s29, %s787_s16 }
  0x62   : > { %p790_p13 = pnand %p789_p10, %p788_p7  ;;  %p796_p9 = scmp.lt.u32.totalorder %s787_s16, %s1121_s11 }
  0x63   : > { %p795_p4 = por %p794_p1, %p793_p2 }
  0x64   : > { %p791_p3 = pneg %p790_p13 }
  0x65   : > { %p797_p0 = por %p796_p9, %p795_p4 }
  0x67   : > { %p798_p6 = pnand %p797_p0, %p791_p3 }
  0x69   : > { %801 = shalt.err (!%p798_p6)
}
  0x6a   : > { %s802_s30 = scalar_lea.vmem %s1127_s13, 128  ;;  %s928_s9 = smov [#allocation2]  }
  0x6b   : > { %p803_p8 = scmp.ne.s32.totalorder %s1127_s13, %s802_s30  ;;  %s807_s10 = sshll.u32 %s928_s9, 4  ;;  %s808_s10 = int_to_ptr.vmem [resolvable:$false] %s807_s10 }
  0x6c   : > { %s809_s12 = scalar_lea.vmem %s808_s10, 256  ;;  %p810_p13 = scmp.lt.s32.totalorder %s1127_s13, %s808_s10 }
  0x6d   : > { %p805_p11 = pnand %p803_p8, %p789_p10  ;;  %p811_p2 = scmp.lt.s32.totalorder %s809_s12, %s802_s30 }
  0x6f   : > { %p806_p7 = pneg %p805_p11  ;;  %p812_p1 = por %p811_p2, %p810_p13 }
  0x71   : > { %p813_p4 = pnand %p812_p1, %p806_p7 }
  0x73   : > { %816 = shalt.err (!%p813_p4)
}
  0x74   : > { %644 = dma.hbm_to_vmem [thread:$0]  (!%p1123_p12), %s1121_s11, 128, %s1127_s13, %s215_s6  }
  0x75   : > { %p1264_p3 = scmp.ne.s32.totalorder %s1258_s26, 0 }
  0x76   : > { %s1157_s16 = sand.u32 (!%p1264_p3), 1, %s913_s19   ;;  %p1265_p10 = scmp.ne.s32.totalorder (!%p1264_p3), %s1256_s24, 0 }
  0x77   : > { %234 = sbr.rel (%p1264_p3) target bundleno = 479 (0x1df), region = 36  ;;  %s574_s28 = sshll.u32 (!%p1264_p3), %s1157_s16, 3 }
  0x78   : > { %s237_s17 = scalar_lea.sflag (!%p1264_p3), [#allocation3], %s1157_s16  ;;  %s240_s29 = scalar_lea.vmem (!%p1264_p3), [#allocation2], %s574_s28 }
  0x7e   : > { %888 = dma.done.wait (%p1265_p10), %s237_s17, 128  }
  0x7f   : > { %890 = vsyncadd (%p1265_p10), %s237_s17, 4294967168  ;;  %p1266_p9 = scmp.eq.s32.totalorder %s986_s22, 0 }
  0x81   : > { %892 = dma.done.wait (%p1266_p9), [#allocation6], 528   ;;  %p1267_p12 = pmov %p1266_p9 }
  0x82   : > { %p1268_p0 = pmov %p1266_p9 }
  0x83   : > { %894 = vsyncadd (%p1267_p12), [#allocation6], 4294966768 }
  0x84   : > { %896 = dma.done.wait (%p1268_p0), [#allocation9], 16   ;;  %p1269_p6 = pmov %p1268_p0 }
  0x85   : > { %v929_v0 = vmov 0.0|0.0   ;;  %vm930_vm0 = vmmov 0   ;;  %v931_v1 = vmov 0.0   ;;  %v280_v2 = vld [vmem:[#allocation5] sm:$0xff]  ;;  %v281_v3 = vld [vmem:[#allocation5 + $0x8] sm:$0xff]  ;;  %v282_v4 = vld [vmem:[#allocation5 + $0x10] sm:$0xff] }
  0x86   : > { %898 = vsyncadd (%p1269_p6), [#allocation9], 4294967280  ;;  %605 = vmatprep.subr.bf16.mxu0 %v929_v0  ;;  %602 = vmatprep.mubr.msk.f32.mxu0 %vm930_vm0, %v931_v1  ;;  %v606_v5 = vpack.c.bf16 %v281_v3, %v280_v2  ;;  %v283_v6 = vld [vmem:[#allocation5 + $0x18] sm:$0xff]  ;;  %vm284_vm1 = vcmask 261120   ;;  %s1173_s24 = scalar_lea.vmem [#allocation10], %s574_s28  ;;  %vm372_vm2 = vcmask 1040384  }
  0x87   : > { %v609_v7 = vpack.c.bf16 %v283_v6, %v282_v4  ;;  %v279_v8 = vld [vmem:[%s240_s29] sm:$0xff]  ;;  %p1270_p8 = scmp.ne.s32.totalorder %s986_s22, 0 }
  0x88   : > { %607 = vmatpush3.bf16.msra.mxu0 %v606_v5 }
  0x89   : > { %608 = vmatprep.subr.bf16.mxu0 %v929_v0 }
  0x8c   : > { %610 = vmatpush3.bf16.msra.mxu0 %v609_v7 }
  0x8f   : > { %603 = vmatmul.mubr.msk.f32.vlgmr.msra.gmra.mrb[0].mxu0 %vm284_vm1, %v279_v8 }
 0x162   : > { %v354_v9 = vpop.f32.mrb[0].mxu0 }
 0x163   : > { %358 = vst [vmem:[%s1173_s24] sm:$0xff] %v354_v9  ;;  %v359_v10 = vrot.slane %v354_v9, 4  ;;  %v365_v11 = vmul.f32 %v354_v9, %v354_v9  ;;  %v604_v12 = vpop.f32.mrb[1].mxu0 }
 0x165   : > { %v360_v13 = vadd.f32 %v359_v10, %v354_v9  ;;  %v366_v14 = vrot.slane %v365_v11, 4 }
 0x167   : > { %v361_v15 = vrot.slane %v360_v13, 2  ;;  %v367_v16 = vadd.f32 %v366_v14, %v365_v11 }
 0x169   : > { %v362_v17 = vadd.f32 %v361_v15, %v360_v13  ;;  %v368_v18 = vrot.slane %v367_v16, 2 }
 0x16b   : > { %v363_v19 = vrot.slane %v362_v17, 1  ;;  %v369_v20 = vadd.f32 %v368_v18, %v367_v16  ;;  %377 = sbr.rel (%p1270_p8) target bundleno = 371 (0x173), region = 56 }
 0x16d   : > { %v370_v21 = vrot.slane %v369_v20, 1  ;;  %v364_v22 = vadd.f32 %v363_v19, %v362_v17 }
 0x16f   : > { %v371_v23 = vadd.f32 %v370_v21, %v369_v20 }
 0x171   : > { %v373_v24 = vsel %vm372_vm2, %v364_v22, %v371_v23 }
 0x172   : > { %378 = vst [vmem:[#allocation11] sm:$0x3] %v373_v24 }
 0x173 PF: > { %p581_p11 = scmp.le.s32.totalorder %s986_s22, 0 }
 0x175   : > { %382 = sbr.rel (%p581_p11) target bundleno = 381 (0x17d), region = 60 }
 0x179   : > { %v383_v25 = vld [vmem:[#allocation11] sm:$0x3] (!%p581_p11) }
 0x17a   : > { %v384_v26 = vadd.f32 (!%p581_p11), %v383_v25, %v373_v24 }
 0x17c   : > { %385 = vst [vmem:[#allocation11] sm:$0x3] %v384_v26 }
 0x17d PF: > { %p582_p7 = scmp.ne.s32.totalorder %s986_s22, 1 }
 0x17e   : > { %v932_v34 = vmov (!%p582_p7), 1966171168   ;;  %v405_v36 = vlaneseq (!%p582_p7)  ;;  %v398_v43 = vld [vmem:[#allocation7] sm:$0x1] (!%p582_p7)  ;;  %v419_v46 = vld [vmem:[#allocation8] sm:$0x1] (!%p582_p7) }
 0x17f   : > { %389 = sbr.rel (%p582_p7) target bundleno = 427 (0x1ab), region = 64  ;;  %v403_v35 = vunpack.c.l.s4 (!%p582_p7), %v932_v34 }
 0x180   : > { %v406_v38 = vshrl.u32 (!%p582_p7), %v405_v36, 7 }
 0x181   : > { %v404_v37 = vunpack.c.0.s8 (!%p582_p7), %v403_v35 }
 0x182   : > { %v425_v48 = vsub.s32 (!%p582_p7), 0, %v406_v38 }
 0x183   : > { %v390_v27 = vld [vmem:[#allocation11] sm:$0x3] (!%p582_p7)  ;;  %v407_v39 = vsub.s32 (!%p582_p7), %v404_v37, %v406_v38 }
 0x184   : > { %v391_v28 = vmul.f32 (!%p582_p7), 0.0625, %v390_v27 }
 0x186   : > { %v392_v29 = vmul.f32 %v391_v28, %v391_v28 }
 0x188   : > { %v394_v30 = vrot.slane %v392_v29, 7 }
 0x18a   : > { %v396_v31 = vsub.f32 %v391_v28, %v394_v30 }
 0x18c   : > { %v397_v32 = vmax.f32 %v396_v31, 0.0 }
 0x18e   : > { %v399_v33 = vadd.f32 1e-05, %v397_v32 }
 0x190   : > { %701 = vrsqrt.f32 %v399_v33 }
 0x19a   : > { %v702_v40 = vpop.eup %701 }
 0x19b   : > { %v408_v41 = vrot.slane %v702_v40, %v407_v39 }
 0x19d   : > { %v409_v42 = vcombine.high %v408_v41, %v408_v41 }
 0x19f   : > { %v416_v44 = vrot.slane %v409_v42, %v407_v39 }
 0x1a1   : > { %v418_v45 = vmul.f32 %v416_v44, %v398_v43 }
 0x1a3   : > { %v420_v47 = vmul.f32 %v418_v45, %v391_v28 }
 0x1a5   : > { %v421_v49 = vsub.f32 %v419_v46, %v420_v47 }
 0x1a7   : > { %v426_v50 = vrot.slane %v421_v49, %v425_v48 }
 0x1a9   : > { %v428_v51 = vsel %vm372_vm2, %v418_v45, %v426_v50 }
 0x1aa   : > { %429 = vst [vmem:[#allocation11] sm:$0x3] %v428_v51 }
 0x1ab PF: > { %s584_s26 = sshll.u32 %s986_s22, 7  ;;  %s444_s6 = sshll.u32 %s1173_s24, 4  ;;  %s445_s6 = int_to_ptr.vmem [resolvable:$true] %s444_s6 }
 0x1ac   : > { %s1186_s15 = scalar_lea.hbm %s1251_s4, %s584_s26  ;;  %s431_s7 = scalar_lea.sflag [#allocation4], %s1157_s16 }
 0x1ad   : > { %s817_s8 = scalar_lea.vmem %s445_s6, 128  ;;  %s933_s30 = smov [#allocation10]  }
 0x1ae   : > { %p818_p13 = scmp.ne.s32.totalorder %s445_s6, %s817_s8  ;;  %s821_s9 = sshll.u32 %s933_s30, 4  ;;  %s822_s9 = int_to_ptr.vmem [resolvable:$false] %s821_s9 }
 0x1af   : > { %s823_s10 = scalar_lea.vmem %s822_s9, 256  ;;  %p824_p4 = scmp.lt.s32.totalorder %s445_s6, %s822_s9 }
 0x1b0   : > { %p819_p2 = pnand %p818_p13, %p1112_p5  ;;  %p825_p3 = scmp.lt.s32.totalorder %s823_s10, %s817_s8 }
 0x1b2   : > { %p820_p1 = pneg %p819_p2  ;;  %p826_p10 = por %p825_p3, %p824_p4 }
 0x1b4   : > { %p827_p9 = pnand %p826_p10, %p820_p1 }
 0x1b6   : > { %830 = shalt.err (!%p827_p9)
}
 0x1b7   : > { %s831_s12 = scalar_lea.hbm %s1186_s15, 128  ;;  %s835_s17 = scalar_lea.hbm %s1251_s4, 256 }
 0x1b8   : > { %p832_p12 = scmp.ne.s32.totalorder %s1186_s15, %s831_s12  ;;  %p836_p8 = scmp.lt.u32.totalorder %s1186_s15, %s1251_s4 }
 0x1b9   : > { %p837_p11 = scmp.lt.u32.totalorder %s835_s17, %s831_s12  ;;  %p839_p13 = scmp.lt.u32.totalorder %s831_s12, %s1186_s15 }
 0x1ba   : > { %p833_p0 = pnand %p832_p12, %p1112_p5 }
 0x1bb   : > { %p838_p7 = por %p837_p11, %p836_p8 }
 0x1bc   : > { %p834_p6 = pneg %p833_p0 }
 0x1bd   : > { %p840_p2 = por %p839_p13, %p838_p7 }
 0x1bf   : > { %p841_p1 = pnand %p840_p2, %p834_p6 }
 0x1c1   : > { %844 = shalt.err (!%p841_p1)
}
 0x1c2   : > { %625 = dma.vmem_to_hbm [thread:$0]  (%p1112_p5), %s445_s6, 128, %s1186_s15, %s431_s7  }
 0x1c3   : > { %s934_s26 = smov [#allocation11]   ;;  %p1271_p3 = scmp.eq.s32.totalorder %s986_s22, 1 }
 0x1c4   : > { %s455_s11 = sshll.u32 %s934_s26, 4  ;;  %s456_s11 = int_to_ptr.vmem [resolvable:$true] %s455_s11 }
 0x1c5   : > { %s845_s13 = scalar_lea.vmem %s456_s11, 32  ;;  %p852_p12 = scmp.lt.s32.totalorder %s456_s11, %s456_s11 }
 0x1c6   : > { %p846_p4 = scmp.ne.s32.totalorder %s456_s11, %s845_s13  ;;  %p853_p0 = scmp.lt.s32.totalorder %s845_s13, %s845_s13 }
 0x1c8   : > { %p847_p10 = pnand %p846_p4, %p1271_p3  ;;  %p854_p8 = por %p853_p0, %p852_p12 }
 0x1ca   : > { %p848_p9 = pneg %p847_p10 }
 0x1cc   : > { %p855_p11 = pnand %p854_p8, %p848_p9 }
 0x1ce   : > { %858 = shalt.err (!%p855_p11)
}
 0x1cf   : > { %s859_s27 = scalar_lea.hbm %s1252_s5, 32  ;;  %p1272_p6 = pmov %p1271_p3 }
 0x1d0   : > { %p860_p5 = scmp.ne.s32.totalorder %s1252_s5, %s859_s27  ;;  %p865_p2 = scmp.lt.u32.totalorder %s859_s27, %s1252_s5 }
 0x1d2   : > { %p861_p7 = pnand %p860_p5, %p1272_p6 }
 0x1d4   : > { %p862_p13 = pneg %p861_p7 }
 0x1d6   : > { %p867_p1 = pnand %p865_p2, %p862_p13 }
 0x1d8   : > { %870 = shalt.err (!%p867_p1)
}
 0x1d9   : > { %p1273_p4 = pmov %p1271_p3 }
 0x1db   : > { %627 = dma.vmem_to_hbm [thread:$0]  (%p1273_p4), %s456_s11, 32, %s1252_s5, [#allocation12]  }
 0x1dc   : > { %900 = dma.done.wait (%p1271_p3), [#allocation12], 32   ;;  %p1274_p10 = pmov %p1271_p3 }
 0x1de   : > { %902 = vsyncadd (%p1274_p10), [#allocation12], 4294967264 }
 0x1df PF: > { %s471_s16 = sand.u32 1, %s909_s18   ;;  %p1275_p9 = scmp.ne.s32.totalorder %s1257_s25, 0 }
 0x1e0   : > { %p1276_p12 = scmp.ge.s32.totalorder %s921_s21, 2  ;;  %s472_s28 = scalar_lea.sflag [#allocation4], %s471_s16 }
 0x1e2   : > { %p646_p0 = pnand %p1276_p12, %p1275_p9 }
 0x1e4   : > { %904 = dma.done.wait (!%p646_p0), %s472_s28, 128  }
 0x1e5   : > { %906 = vsyncadd (!%p646_p0), %s472_s28, 4294967168  ;;  %p22_p8 = scmp.ge.s32.totalorder %s1098_s14, 4   ;;  %s1277_s18 = smov %s913_s19 }
 0x1e6   : > { %s1278_s19 = smov %s917_s20  ;;  %s1279_s20 = smov %s1108_s23 }
 0x1e7   : > { %s1280_s21 = smov %s1098_s14  ;;  %24 = sbr.rel (!%p22_p8) target bundleno = 8 (0x8), region = 113 }
 0x1ee   :  { %477 = vsyncpa [#allocation3], 1 }
 0x1ef   :  { %479 = vsyncpa [#allocation3 + $0x1], 1 }
 0x1f0   :  { %480 = vsyncpa [#allocation6], 1 }
 0x1f1   :  { %481 = vsyncpa [#allocation9], 1 }
 0x1f2   :  { %482 = vsyncpa [#allocation4], 1 }
 0x1f3   :  { %484 = vsyncpa [#allocation4 + $0x1], 1 }
 0x1f4   :  { %485 = vsyncpa [#allocation12], 1 }

// kernel: projection_forward.3
= control target key start
LH: loop header
LB: loop body
LE: loop exit
PB: predicated region body
PF: predicated region fallthrough
CT: control target
= control target key end

     0   :  { %8 = vsyncpa [#allocation3], 0  ;;  %s1004_s0 = inlined_call_operand.hbm [shape: f32[16,128], index: 0, kind: input, shape index: {}]   ;;  %s1005_s1 = inlined_call_operand.hbm [shape: f32[2,128], index: 1, kind: input, shape index: {}]   ;;  %s1006_s2 = inlined_call_operand.hbm [shape: f32[128,128], index: 2, kind: input, shape index: {}]   ;;  %s1007_s3 = inlined_call_operand.hbm [shape: f32[16,128], index: 3, kind: output, shape index: {}]  }
   0x1   :  { %10 = vsyncpa [#allocation3 + $0x1], 0 }
   0x2   :  { %11 = vsyncpa [#allocation6], 0 }
   0x3   :  { %12 = vsyncpa [#allocation4], 0 }
   0x4   :  { %14 = vsyncpa [#allocation4 + $0x1], 0  ;;  %s775_s12 = smov 0   ;;  %s777_s13 = smov 0  }
   0x5   :  { %s779_s14 = smov 0   ;;  %s781_s15 = smov 0  }
   0x6 LB: > { %s796_s16 = sadd.s32 4294967295, %s744_s15   ;;  %s422_s17 = sadd.s32 4294967294, %s744_s15   ;;  %s744_s15 = sphi %s781_s15, %s1027_s15   ;;  %s740_s14 = sphi %s779_s14, %s1026_s14   ;;  %s736_s13 = sphi %s777_s13, %s1025_s13   ;;  %s732_s12 = sphi %s775_s12, %s1024_s12  }
   0x7   : > { %p40_p0 = scmp.ne.s32.totalorder %s736_s13, %s732_s12  ;;  %p1008_p1 = scmp.eq.s32.totalorder %s796_s16, 0 }
   0x8   : > { %p112_p3 = scmp.eq.s32.totalorder %s422_s17, 1  ;;  %p423_p5 = scmp.ge.s32.totalorder %s744_s15, 1 }
   0x9   : > { %p805_p4 = por %p1008_p1, %p40_p0  ;;  %p119_p7 = scmp.lt.s32.totalorder %s744_s15, 3 }
   0xa   : > { %p810_p6 = por %p112_p3, %p40_p0  ;;  %s746_s21 = smov [#allocation5]  }
   0xb   : > { %s1011_s18 = scalar_select %p805_p4, 1, 0 }
   0xc   : > { %s1012_s19 = scalar_select %p810_p6, 1, 0 }
   0xd   : > { %p815_p8 = pnand %p423_p5, %p119_p7  ;;  %s132_s22 = sshll.u32 %s746_s21, 4  ;;  %s133_s22 = int_to_ptr.vmem [resolvable:$true] %s132_s22 }
   0xe   : > { %s747_s23 = smov [#allocation7]   ;;  %s588_s28 = scalar_lea.hbm %s1005_s1, 32 }
   0xf   : > { %s1013_s20 = scalar_select %p815_p8, 1, 0 }
  0x10   : > { %p526_p10 = pneg %p815_p8  ;;  %s142_s24 = sshll.u32 %s747_s23, 4  ;;  %s828_s24 = int_to_ptr.vmem [resolvable:$true] %s142_s24 }
  0x11   : > { %p589_p12 = scmp.ne.s32.totalorder %s1005_s1, %s588_s28  ;;  %p595_p5 = scmp.lt.u32.totalorder %s588_s28, %s1005_s1 }
  0x12   : > { %p824_p11 = pnand %p526_p10, %p1008_p1 }
  0x14   : > { %p590_p13 = pneg %p824_p11 }
  0x16   : > { %p591_p0 = pnand %p590_p13, %p589_p12 }
  0x18   : > { %p592_p3 = pneg %p591_p0 }
  0x1a   : > { %p597_p7 = pnand %p595_p5, %p592_p3 }
  0x1c   : > { %600 = shalt.err (!%p597_p7)
}
  0x1d   : > { %s601_s6 = scalar_lea.vmem %s133_s22, 32  ;;  %p609_p2 = scmp.lt.s32.totalorder %s133_s22, %s133_s22 }
  0x1e   : > { %p602_p10 = scmp.ne.s32.totalorder %s133_s22, %s601_s6  ;;  %p610_p6 = scmp.lt.s32.totalorder %s601_s6, %s601_s6 }
  0x20   : > { %p604_p9 = pnand %p602_p10, %p590_p13  ;;  %p611_p4 = por %p610_p6, %p609_p2 }
  0x22   : > { %p605_p1 = pneg %p604_p9 }
  0x24   : > { %p612_p8 = pnand %p611_p4, %p605_p1 }
  0x26   : > { %615 = shalt.err (!%p612_p8)
}
  0x27   : > { %529 = dma.hbm_to_vmem [thread:$0]  (!%p824_p11), %s1005_s1, 32, %s133_s22, [#allocation6]  }
  0x28   : > { %s616_s11 = scalar_lea.hbm %s1006_s2, 2048 }
  0x29   : > { %p617_p9 = scmp.ne.s32.totalorder %s1006_s2, %s616_s11  ;;  %p623_p4 = scmp.lt.u32.totalorder %s616_s11, %s1006_s2 }
  0x2b   : > { %p619_p2 = pnand %p617_p9, %p590_p13 }
  0x2d   : > { %p620_p1 = pneg %p619_p2 }
  0x2f   : > { %p625_p6 = pnand %p623_p4, %p620_p1 }
  0x31   : > { %628 = shalt.err (!%p625_p6)
}
  0x32   : > { %s629_s22 = scalar_lea.vmem %s828_s24, 2048  ;;  %p637_p3 = scmp.lt.s32.totalorder %s828_s24, %s828_s24 }
  0x33   : > { %p630_p8 = scmp.ne.s32.totalorder %s828_s24, %s629_s22  ;;  %p638_p5 = scmp.lt.s32.totalorder %s629_s22, %s629_s22 }
  0x35   : > { %p632_p12 = pnand %p630_p8, %p590_p13  ;;  %p639_p7 = por %p638_p5, %p637_p3 }
  0x37   : > { %p633_p0 = pneg %p632_p12 }
  0x39   : > { %p640_p10 = pnand %p639_p7, %p633_p0 }
  0x3b   : > { %643 = shalt.err (!%p640_p10)
}
  0x3c   : > { %s748_s27 = smov 128   ;;  %s749_s28 = smov 8  }
  0x3d   : > { %532 = dma.hbm_to_vmem [thread:$0]  (!%p824_p11), %s1006_s2, 2048, %s828_s24, [#allocation6], %s748_s27, %s748_s27, %s749_s28  }
  0x3e   : > { %s878_s4 = sadd.s32 1, %s744_s15   ;;  %s27_s5 = sadd.s32 1, %s740_s14 }
  0x3f   : > { %s24_s6 = ssub.s32 %s744_s15, %s878_s4  ;;  %p34_p13 = scmp.ne.s32.totalorder %s740_s14, %s736_s13 }
  0x40   : > { %p25_p9 = scmp.eq.s32.totalorder %s24_s6, 0  ;;  %p35_p2 = scmp.eq.s32.totalorder %s744_s15, 0 }
  0x41   : > { %p1015_p1 = scmp.eq.s32.totalorder %s796_s16, 1  ;;  %p543_p6 = scmp.lt.s32.totalorder %s744_s15, 2 }
  0x42   : > { %s894_s8 = scalar_select %p25_p9, %s740_s14, %s27_s5  }
  0x43   : > { %p888_p4 = por %p1015_p1, %p34_p13  ;;  %p36_p8 = por %p35_p2, %p34_p13 }
  0x44   : > { %s156_s25 = sand.u32 1, %s740_s14   ;;  %s428_s24 = sshll.u32 %s744_s15, 7 }
  0x45   : > { %s427_s9 = sshll.u32 %s156_s25, 3  ;;  %s901_s17 = scalar_lea.hbm %s1004_s0, %s428_s24 }
  0x46   : > { %s160_s21 = scalar_lea.vmem [#allocation2], %s427_s9  ;;  %p905_p11 = pnand %p543_p6, %p36_p8 }
  0x47   : > { %s167_s23 = sshll.u32 %s160_s21, 4  ;;  %s157_s22 = scalar_lea.sflag [#allocation3], %s156_s25  ;;  %s903_s23 = int_to_ptr.vmem [resolvable:$true] %s167_s23 }
  0x48   : > { %s644_s27 = scalar_lea.hbm %s901_s17, 128  ;;  %p646_p0 = pneg %p905_p11 }
  0x49   : > { %p645_p12 = scmp.ne.s32.totalorder %s901_s17, %s644_s27  ;;  %s649_s30 = scalar_lea.hbm %s1004_s0, 256 }
  0x4a   : > { %p650_p7 = scmp.lt.u32.totalorder %s901_s17, %s1004_s0  ;;  %p651_p10 = scmp.lt.u32.totalorder %s649_s30, %s644_s27 }
  0x4b   : > { %p647_p3 = pnand %p646_p0, %p645_p12  ;;  %p653_p9 = scmp.lt.u32.totalorder %s644_s27, %s901_s17 }
  0x4c   : > { %p652_p13 = por %p651_p10, %p650_p7 }
  0x4d   : > { %p648_p5 = pneg %p647_p3 }
  0x4e   : > { %p654_p2 = por %p653_p9, %p652_p13 }
  0x50   : > { %p655_p1 = pnand %p654_p2, %p648_p5 }
  0x52   : > { %658 = shalt.err (!%p655_p1)
}
  0x53   : > { %s659_s25 = scalar_lea.vmem %s903_s23, 128  ;;  %s750_s9 = smov [#allocation2]  }
  0x54   : > { %p660_p6 = scmp.ne.s32.totalorder %s903_s23, %s659_s25  ;;  %s664_s24 = sshll.u32 %s750_s9, 4  ;;  %s665_s24 = int_to_ptr.vmem [resolvable:$false] %s664_s24 }
  0x55   : > { %s666_s10 = scalar_lea.vmem %s665_s24, 256  ;;  %p667_p3 = scmp.lt.s32.totalorder %s903_s23, %s665_s24 }
  0x56   : > { %p662_p8 = pnand %p660_p6, %p646_p0  ;;  %p668_p7 = scmp.lt.s32.totalorder %s666_s10, %s659_s25 }
  0x58   : > { %p663_p12 = pneg %p662_p8  ;;  %p669_p10 = por %p668_p7, %p667_p3 }
  0x5a   : > { %p670_p13 = pnand %p669_p10, %p663_p12 }
  0x5c   : > { %673 = shalt.err (!%p670_p13)
}
  0x5d   : > { %536 = dma.hbm_to_vmem [thread:$0]  (!%p905_p11), %s901_s17, 128, %s903_s23, %s157_s22  }
  0x5e   : > { %p1018_p5 = scmp.ne.s32.totalorder %s1013_s20, 0 }
  0x5f   : > { %s937_s11 = sand.u32 (!%p1018_p5), 1, %s736_s13   ;;  %p1019_p0 = scmp.ne.s32.totalorder (!%p1018_p5), %s1011_s18, 0 }
  0x60   : > { %176 = sbr.rel (%p1018_p5) target bundleno = 526 (0x20e), region = 32  ;;  %s430_s21 = sshll.u32 (!%p1018_p5), %s937_s11, 3 }
  0x61   : > { %s179_s27 = scalar_lea.sflag (!%p1018_p5), [#allocation3], %s937_s11  ;;  %s943_s28 = scalar_lea.vmem (!%p1018_p5), [#allocation2], %s430_s21 }
  0x67   : > { %719 = dma.done.wait (%p1019_p0), %s179_s27, 128  }
  0x68   : > { %721 = vsyncadd (%p1019_p0), %s179_s27, 4294967168  ;;  %p1020_p11 = scmp.eq.s32.totalorder %s796_s16, 0 }
  0x6a   : > { %723 = dma.done.wait (%p1020_p11), [#allocation6], 2080   ;;  %p1021_p9 = pmov %p1020_p11 }
  0x6b   : > { %v751_v0 = vmov 0.0|0.0   ;;  %vm752_vm0 = vmmov 0   ;;  %v753_v1 = vmov 0.0   ;;  %v226_v2 = vld [vmem:[#allocation7] sm:$0xff]  ;;  %v227_v3 = vld [vmem:[#allocation7 + $0x8] sm:$0xff]  ;;  %v228_v4 = vld [vmem:[#allocation7 + $0x10] sm:$0xff]  ;;  %v215_v10 = vlaneseq }
  0x6c   : > { %725 = vsyncadd (%p1021_p9), [#allocation6], 4294965216  ;;  %490 = vmatprep.subr.bf16.mxu0 %v751_v0  ;;  %487 = vmatprep.mubr.msk.f32.mxu0 %vm752_vm0, %v753_v1  ;;  %v491_v5 = vpack.c.bf16 %v227_v3, %v226_v2  ;;  %v229_v6 = vld [vmem:[#allocation7 + $0x18] sm:$0xff]  ;;  %v230_v8 = vld [vmem:[#allocation7 + $0x20] sm:$0xff]  ;;  %s435_s18 = sshll.u32 %s796_s16, 7  ;;  %s212_s20 = scalar_lea.vmem [#allocation8], %s430_s21 }
  0x6d   : > { %v494_v7 = vpack.c.bf16 %v229_v6, %v228_v4  ;;  %v231_v9 = vld [vmem:[#allocation7 + $0x28] sm:$0xff]  ;;  %v232_v12 = vld [vmem:[#allocation7 + $0x30] sm:$0xff]  ;;  %v233_v13 = vld [vmem:[#allocation7 + $0x38] sm:$0xff]  ;;  %v216_v14 = vshrl.u32 %v215_v10, 7  ;;  %s333_s17 = sshll.u32 %s212_s20, 4  ;;  %s960_s22 = scalar_lea.hbm %s1007_s3, %s435_s18  ;;  %s962_s17 = int_to_ptr.vmem [resolvable:$true] %s333_s17 }
  0x6e   : > { %492 = vmatpush3.bf16.msra.mxu0 %v491_v5  ;;  %v497_v11 = vpack.c.bf16 %v231_v9, %v230_v8  ;;  %v500_v15 = vpack.c.bf16 %v233_v13, %v232_v12  ;;  %v234_v16 = vld [vmem:[#allocation7 + $0x40] sm:$0xff]  ;;  %v235_v17 = vld [vmem:[#allocation7 + $0x48] sm:$0xff]  ;;  %v213_v20 = vld [vmem:[#allocation5] sm:$0x3]  ;;  %s320_s29 = scalar_lea.sflag [#allocation4], %s937_s11  ;;  %s674_s30 = scalar_lea.vmem %s962_s17, 128 }
  0x6f   : > { %493 = vmatprep.subr.bf16.mxu0 %v751_v0  ;;  %v217_v18 = vsub.s32 0, %v216_v14  ;;  %v503_v19 = vpack.c.bf16 %v235_v17, %v234_v16  ;;  %v236_v21 = vld [vmem:[#allocation7 + $0x50] sm:$0xff]  ;;  %v237_v22 = vld [vmem:[#allocation7 + $0x58] sm:$0xff]  ;;  %v222_v24 = vsub.s32 1, %v216_v14  ;;  %v238_v27 = vld [vmem:[#allocation7 + $0x60] sm:$0xff]  ;;  %p675_p2 = scmp.ne.s32.totalorder %s962_s17, %s674_s30  ;;  %s754_s16 = smov [#allocation8]  }
  0x70   : > { %v506_v25 = vpack.c.bf16 %v237_v22, %v236_v21  ;;  %v214_v26 = vld [vmem:[%s943_s28] sm:$0xff]  ;;  %s678_s5 = sshll.u32 %s754_s16, 4  ;;  %s679_s5 = int_to_ptr.vmem [resolvable:$false] %s678_s5 }
  0x71   : > { %v218_v23 = vrot.slane %v213_v20, %v217_v18  ;;  %v239_v28 = vld [vmem:[#allocation7 + $0x68] sm:$0xff]  ;;  %v223_v30 = vrot.slane %v213_v20, %v222_v24  ;;  %v240_v32 = vld [vmem:[#allocation7 + $0x70] sm:$0xff]  ;;  %v241_v33 = vld [vmem:[#allocation7 + $0x78] sm:$0xff]  ;;  %p676_p1 = pnand %p675_p2, %p888_p4  ;;  %s680_s6 = scalar_lea.vmem %s679_s5, 256 }
  0x72   : > { %495 = vmatpush3.bf16.msra.mxu0 %v494_v7  ;;  %v509_v31 = vpack.c.bf16 %v239_v28, %v238_v27  ;;  %v512_v35 = vpack.c.bf16 %v241_v33, %v240_v32  ;;  %p681_p8 = scmp.lt.s32.totalorder %s962_s17, %s679_s5  ;;  %p682_p12 = scmp.lt.s32.totalorder %s680_s6, %s674_s30 }
  0x73   : > { %496 = vmatprep.subr.bf16.mxu0 %v751_v0  ;;  %v219_v29 = vmul.f32 %v218_v23, %v214_v26  ;;  %p677_p6 = pneg %p676_p1 }
  0x74   : > { %p683_p3 = por %p682_p12, %p681_p8 }
  0x75   : > { %v224_v34 = vadd.f32 %v223_v30, %v219_v29 }
  0x76   : > { %498 = vmatpush3.bf16.msra.mxu0 %v497_v11  ;;  %p684_p7 = pnand %p683_p3, %p677_p6 }
  0x77   : > { %499 = vmatprep.subr.bf16.mxu0 %v751_v0  ;;  %v225_v36 = vmax.f32 %v224_v34, 0.0 }
  0x7a   : > { %501 = vmatpush3.bf16.msra.mxu0 %v500_v15 }
  0x7b   : > { %502 = vmatprep.subr.bf16.mxu0 %v751_v0 }
  0x7e   : > { %504 = vmatpush3.bf16.msra.mxu0 %v503_v19 }
  0x7f   : > { %505 = vmatprep.subr.bf16.mxu0 %v751_v0 }
  0x82   : > { %507 = vmatpush3.bf16.msra.mxu0 %v506_v25 }
  0x83   : > { %508 = vmatprep.subr.bf16.mxu0 %v751_v0 }
  0x86   : > { %510 = vmatpush3.bf16.msra.mxu0 %v509_v31 }
  0x87   : > { %511 = vmatprep.subr.bf16.mxu0 %v751_v0 }
  0x8a   : > { %513 = vmatpush3.bf16.msra.mxu0 %v512_v35 }
  0x8d   : > { %488 = vmatmul.mubr.f32.vlgmr.msra.gmra.mrb[0].mxu0 %v225_v36 }
 0x160   : > { %v308_v37 = vpop.f32.mrb[0].mxu0 }
 0x161   : > { %v489_v38 = vpop.f32.mrb[1].mxu0  ;;  %v312_v39 = vmul.f32 %v308_v37, %v308_v37 }
 0x163   : > { %313 = vadd.xlane.f32.xlu0 %v312_v39 }
 0x1f0   : > { %v314_v40 = vpop.xlane.xlu0 %313 }
 0x1f1   : > { %v315_v41 = vmax.f32 %v314_v40, 1e-24 }
 0x1f3   : > { %586 = vrsqrt.f32 %v315_v41 }
 0x1fd   : > { %v587_v42 = vpop.eup %586 }
 0x1fe   : > { %v317_v43 = vmul.f32 %v587_v42, %v308_v37 }
 0x200   : > { %318 = vst [vmem:[%s212_s20] sm:$0xff] %v317_v43 }
 0x201   : > { %687 = shalt.err (!%p684_p7)
}
 0x202   : > { %s688_s25 = scalar_lea.hbm %s960_s22, 128  ;;  %s692_s10 = scalar_lea.hbm %s1007_s3, 256 }
 0x203   : > { %p689_p10 = scmp.ne.s32.totalorder %s960_s22, %s688_s25  ;;  %p693_p0 = scmp.lt.u32.totalorder %s960_s22, %s1007_s3 }
 0x204   : > { %p694_p11 = scmp.lt.u32.totalorder %s692_s10, %s688_s25  ;;  %p696_p2 = scmp.lt.u32.totalorder %s688_s25, %s960_s22 }
 0x205   : > { %p690_p13 = pnand %p689_p10, %p888_p4 }
 0x206   : > { %p695_p9 = por %p694_p11, %p693_p0 }
 0x207   : > { %p691_p5 = pneg %p690_p13 }
 0x208   : > { %p697_p1 = por %p696_p2, %p695_p9 }
 0x20a   : > { %p698_p6 = pnand %p697_p1, %p691_p5 }
 0x20c   : > { %701 = shalt.err (!%p698_p6)
}
 0x20d   : > { %524 = dma.vmem_to_hbm [thread:$0]  (%p888_p4), %s962_s17, 128, %s960_s22, %s320_s29  }
 0x20e PF: > { %s345_s27 = sand.u32 1, %s732_s12   ;;  %p1022_p8 = scmp.ne.s32.totalorder %s1012_s19, 0 }
 0x20f   : > { %p1023_p12 = scmp.ge.s32.totalorder %s744_s15, 2  ;;  %s346_s28 = scalar_lea.sflag [#allocation4], %s345_s27 }
 0x211   : > { %p538_p3 = pnand %p1023_p12, %p1022_p8 }
 0x213   : > { %727 = dma.done.wait (!%p538_p3), %s346_s28, 128  }
 0x214   : > { %729 = vsyncadd (!%p538_p3), %s346_s28, 4294967168  ;;  %p17_p7 = scmp.ge.s32.totalorder %s878_s4, 4   ;;  %s1024_s12 = smov %s736_s13 }
 0x215   : > { %s1025_s13 = smov %s740_s14  ;;  %s1026_s14 = smov %s894_s8 }
 0x216   : > { %s1027_s15 = smov %s878_s4  ;;  %19 = sbr.rel (!%p17_p7) target bundleno = 6 (0x6), region = 85 }
 0x21d   :  { %351 = vsyncpa [#allocation3], 1 }
 0x21e   :  { %353 = vsyncpa [#allocation3 + $0x1], 1 }
 0x21f   :  { %354 = vsyncpa [#allocation6], 1 }
 0x220   :  { %355 = vsyncpa [#allocation4], 1 }
 0x221   :  { %357 = vsyncpa [#allocation4 + $0x1], 1 }

</bundles_post_ra>
